<compile_context>
chip_gen: v7x
topology: tpu7x:2x2x1
jax: 0.10.0
libtpu: 0.0.40
codegen_flags: <defaults>
</compile_context>

<pallas_src>
import functools

import jax
import jax.numpy as jnp
from jax.experimental import pallas as pl
from jax.experimental.pallas import tpu as pltpu

BN_EPS = 1e-5


def _round_up(v, m):
    return ((v + m - 1) // m) * m


def _vmem_limit_bytes():
    """Generation-aware VMEM limit: ~85% of physical, conservative fallback."""
    cap = 64 * 1024 * 1024          # v7x per-core VMEM (smallest current part)
    try:
        info = pltpu.get_tpu_info()
        cap = int(getattr(info, "vmem_capacity_bytes", cap)) or cap
    except Exception:
        pass
    limit = min(int(cap * 0.85), cap - (8 << 20))
    return max(limit, 32 << 20)


# ----------------------------------------------------------------------------
# Fast path: whole batch resident in VMEM, single invocation, no grid.
# ----------------------------------------------------------------------------
def _mlp_single_block_kernel(x_ref, w2t_ref, g1_ref, be1_ref, g2_ref, be2_ref,
                             o_ref):
    x = x_ref[...].astype(jnp.float32)
    m1 = jnp.mean(x, axis=0, keepdims=True)
    d1 = x - m1
    v1 = jnp.mean(d1 * d1, axis=0, keepdims=True)            # exact 2-pass var
    h = d1 * jax.lax.rsqrt(v1 + BN_EPS) * g1_ref[...] + be1_ref[...]
    h = jnp.maximum(h, 0.0)                                   # ReLU
    y = jnp.dot(h.astype(jnp.bfloat16), w2t_ref[...],         # Linear2, no bias
                preferred_element_type=jnp.float32)
    m2 = jnp.mean(y, axis=0, keepdims=True)
    d2 = y - m2
    v2 = jnp.mean(d2 * d2, axis=0, keepdims=True)
    out = d2 * jax.lax.rsqrt(v2 + BN_EPS) * g2_ref[...] + be2_ref[...]
    o_ref[...] = out.astype(o_ref.dtype)


# ----------------------------------------------------------------------------
# Tiled 3-phase path (global BatchNorm stats over a tiled batch axis).
#   phase 0: accumulate sum / sumsq of x
#   phase 1: fold BN1 once; per tile h = relu(x*scale1+shift1); y = h @ W2^T;
#            stage y in VMEM; accumulate sum / sumsq of y
#   phase 2: fold BN2 once; per tile normalize the staged y and store
# ----------------------------------------------------------------------------
def _mlp_tiled_kernel(x_ref, w2t_ref, g1_ref, be1_ref, g2_ref, be2_ref, o_ref,
                      s1_ref, ss1_ref, s2_ref, ss2_ref, ystg_ref,
                      *, inv_n, tile_n, n_valid, stage_y, needs_mask):
    phase = pl.program_id(0)
    tile = pl.program_id(1)
    row0 = pl.multiple_of(tile * tile_n, tile_n)

    def valid_mask():
        rows = jax.lax.broadcasted_iota(jnp.int32, (tile_n, 1), 0) + tile * tile_n
        return rows < n_valid

    def compute_y():
        # BN1 already folded into (scale1, shift1) living in s1/ss1 scratch.
        x = x_ref[...].astype(jnp.float32)
        h = jnp.maximum(x * s1_ref[...] + ss1_ref[...], 0.0)
        return jnp.dot(h.astype(jnp.bfloat16), w2t_ref[...],
                       preferred_element_type=jnp.float32)

    # ---- phase 0: BN1 batch statistics of x (one-pass sum / sumsq) ----
    @pl.when(phase == 0)
    def _():
        @pl.when(tile == 0)
        def _():
            s1_ref[...] = jnp.zeros_like(s1_ref)
            ss1_ref[...] = jnp.zeros_like(ss1_ref)
            s2_ref[...] = jnp.zeros_like(s2_ref)
            ss2_ref[...] = jnp.zeros_like(ss2_ref)

        x = x_ref[...].astype(jnp.float32)
        if needs_mask:
            x = jnp.where(valid_mask(), x, 0.0)
        s1_ref[...] += jnp.sum(x, axis=0, keepdims=True)
        ss1_ref[...] += jnp.sum(x * x, axis=0, keepdims=True)

    # ---- phase 1: fold BN1, compute + stage y, accumulate BN2 statistics ----
    @pl.when(phase == 1)
    def _():
        @pl.when(tile == 0)
        def _():
            mean1 = s1_ref[...] * inv_n
            var1 = jnp.maximum(ss1_ref[...] * inv_n - mean1 * mean1, 0.0)
            scale1 = g1_ref[...] * jax.lax.rsqrt(var1 + BN_EPS)
            s1_ref[...] = scale1                              # s1  := BN1 scale
            ss1_ref[...] = be1_ref[...] - mean1 * scale1      # ss1 := BN1 shift

        y = compute_y()
        if stage_y:
            ystg_ref[pl.ds(row0, tile_n), :] = y
        ys = jnp.where(valid_mask(), y, 0.0) if needs_mask else y
        s2_ref[...] += jnp.sum(ys, axis=0, keepdims=True)
        ss2_ref[...] += jnp.sum(ys * ys, axis=0, keepdims=True)

    # ---- phase 2: fold BN2, normalize staged (or recomputed) y, store ----
    @pl.when(phase == 2)
    def _():
        @pl.when(tile == 0)
        def _():
            mean2 = s2_ref[...] * inv_n
            var2 = jnp.maximum(ss2_ref[...] * inv_n - mean2 * mean2, 0.0)
            scale2 = g2_ref[...] * jax.lax.rsqrt(var2 + BN_EPS)
            s2_ref[...] = scale2                              # s2  := BN2 scale
            ss2_ref[...] = be2_ref[...] - mean2 * scale2      # ss2 := BN2 shift

        if stage_y:
            y = ystg_ref[pl.ds(row0, tile_n), :]
        else:
            y = compute_y()                                   # recompute fallback
        o_ref[...] = (y * s2_ref[...] + ss2_ref[...]).astype(o_ref.dtype)


def mlp_forward(x, w1, b1, w2, gamma1, beta1, gamma2, beta2, *,
                _force_tiled=False, _force_tile_n=None, _force_stage_y=None):
    """x: (N, in_features) f32.  PyTorch conventions: w1 (in,in), b1 (in,),
    w2 (out,in).  w1/b1 feed the dead first Linear (its result is overwritten
    in the reference forward) and are intentionally unused -> never DMA'd."""
    del w1, b1

    n, fin = x.shape
    fout = w2.shape[0]
    fout_pad = _round_up(fout, 128)             # lane-dense output stores

    # Glue: pre-transpose + bf16-cast the Linear2 weight, zero-pad to fout_pad;
    # reshape 1-D BN params to (1, F) rows (padding is sliced off at the end).
    w2t = jnp.zeros((fin, fout_pad), jnp.bfloat16)
    w2t = w2t.at[:, :fout].set(w2.T.astype(jnp.bfloat16))
    g1 = gamma1.reshape(1, fin).astype(jnp.float32)
    be1 = beta1.reshape(1, fin).astype(jnp.float32)
    g2 = jnp.zeros((1, fout_pad), jnp.float32).at[0, :fout].set(
        gamma2.astype(jnp.float32))
    be2 = jnp.zeros((1, fout_pad), jnp.float32).at[0, :fout].set(
        beta2.astype(jnp.float32))

    vmem_limit = _vmem_limit_bytes()

    # -------------------- small-problem fast path (no grid) --------------------
    fast_bytes = (4 * n * fin                 # x f32
                  + 2 * n * fin               # h bf16
                  + 2 * 4 * n * fout_pad      # y f32 + output f32
                  + 2 * fin * fout_pad        # W2^T bf16
                  + 4 * 4 * (fin + fout_pad))
    if (not _force_tiled) and 2 * fast_bytes <= vmem_limit:
        out_padded = pl.pallas_call(
            _mlp_single_block_kernel,
            out_shape=jax.ShapeDtypeStruct((n, fout_pad), jnp.float32),
            compiler_params=pltpu.CompilerParams(vmem_limit_bytes=vmem_limit),
        )(x, w2t, g1, be1, g2, be2)
        return out_padded[:, :fout]

    # ------------------------------ tiled path --------------------------------
    # Budget for batch tiles = limit - resident weight/params/stats - headroom.
    fixed = (2 * (fin * fout_pad * 2)            # W2^T bf16, double-buffered
             + 2 * 4 * 2 * (fin + fout_pad)      # gamma/beta rows, double-buffered
             + 4 * 4 * (fin + fout_pad))         # sum/sumsq scratch rows
    tile_budget = max(vmem_limit - fixed - (2 << 20), 1 << 20)

    # y staging removes the phase-2 recompute and the phase-2 x stream.
    y_bytes_ub = _round_up(n, 1024) * fout_pad * 4   # padding adds < tile cap rows
    stage_y = y_bytes_ub <= tile_budget // 2
    if _force_stage_y is not None:
        stage_y = bool(_force_stage_y)
    if stage_y:
        tile_budget -= y_bytes_ub

    # Largest batch tile (multiple of 8, capped where the mem-bound roofline
    # flattens) whose double-buffered x/out tiles + in-kernel temporaries fit.
    per_row = (2 * 4 * fin               # x tile f32, double-buffered
               + 2 * 4 * fout_pad        # out tile f32, double-buffered
               + 4 * fin + 2 * fin       # in-kernel f32 x + bf16 h temporaries
               + 4 * fout_pad)           # in-kernel f32 y temporary
    tile_n = max(8, min(1024, (tile_budget // per_row) // 8 * 8))
    if _force_tile_n is not None:
        tile_n = max(8, (_force_tile_n // 8) * 8)
    tile_n = min(tile_n, _round_up(n, 8))

    num_tiles = pl.cdiv(n, tile_n)               # cdiv grid, no divisor search
    n_pad = num_tiles * tile_n
    needs_mask = n_pad != n
    x_in = x if not needs_mask else jnp.zeros((n_pad, fin), x.dtype).at[:n].set(x)

    # With y staged, phase 2 never touches x: pin its block index to 0 during
    # phase 2 so the pipeline does not re-stream x from HBM (3 -> 2 x reads).
    if stage_y:
        x_index_map = lambda p, t: (t * (1 - p // 2), 0)
    else:
        x_index_map = lambda p, t: (t, 0)

    kernel = functools.partial(
        _mlp_tiled_kernel, inv_n=1.0 / n, tile_n=tile_n, n_valid=n,
        stage_y=stage_y, needs_mask=needs_mask)

    ystg_shape = (n_pad, fout_pad) if stage_y else (8, fout_pad)  # dummy if unused

    out_padded = pl.pallas_call(
        kernel,
        out_shape=jax.ShapeDtypeStruct((n_pad, fout_pad), jnp.float32),
        grid_spec=pltpu.PrefetchScalarGridSpec(
            num_scalar_prefetch=0,
            grid=(3, num_tiles),                                   # (phase, batch tile)
            in_specs=[
                pl.BlockSpec((tile_n, fin), x_index_map),            # x tile
                pl.BlockSpec((fin, fout_pad), lambda p, t: (0, 0)),  # W2^T (resident)
                pl.BlockSpec((1, fin), lambda p, t: (0, 0)),         # gamma1
                pl.BlockSpec((1, fin), lambda p, t: (0, 0)),         # beta1
                pl.BlockSpec((1, fout_pad), lambda p, t: (0, 0)),    # gamma2
                pl.BlockSpec((1, fout_pad), lambda p, t: (0, 0)),    # beta2
            ],
            # Output block index only advances during phase 2 (p//2 == 1), so
            # the two statistics phases cause no garbage writebacks.
            out_specs=pl.BlockSpec((tile_n, fout_pad),
                                   lambda p, t: (t * (p // 2), 0)),
            scratch_shapes=[
                pltpu.VMEM((1, fin), jnp.float32),       # sum(x)   -> BN1 scale
                pltpu.VMEM((1, fin), jnp.float32),       # sum(x^2) -> BN1 shift
                pltpu.VMEM((1, fout_pad), jnp.float32),  # sum(y)   -> BN2 scale
                pltpu.VMEM((1, fout_pad), jnp.float32),  # sum(y^2) -> BN2 shift
                pltpu.VMEM(ystg_shape, jnp.float32),     # staged unnormalized y
            ],
        ),
        # Global BatchNorm statistics accumulate across batch tiles, so both
        # grid axes run serially.  (A v7x feature-parallel split over fout_pad
        # slabs would be the next step for wide outputs.)
        compiler_params=pltpu.CompilerParams(
            dimension_semantics=("arbitrary", "arbitrary"),
            vmem_limit_bytes=vmem_limit,
        ),
    )(x_in, w2t, g1, be1, g2, be2)

    return out_padded[:n, :fout]


# ----------------------------------------------------------------------------
# Pure-JAX references.
# ----------------------------------------------------------------------------
def _reference_f32(x, w2, gamma1, beta1, gamma2, beta2):
    m1 = jnp.mean(x, axis=0, keepdims=True)
    v1 = jnp.mean((x - m1) ** 2, axis=0, keepdims=True)
    h = (x - m1) / jnp.sqrt(v1 + BN_EPS) * gamma1 + beta1
    h = jnp.maximum(h, 0.0)
    y = h @ w2.T
    m2 = jnp.mean(y, axis=0, keepdims=True)
    v2 = jnp.mean((y - m2) ** 2, axis=0, keepdims=True)
    return (y - m2) / jnp.sqrt(v2 + BN_EPS) * gamma2 + beta2


def _reference_bf16_matmul(x, w2, gamma1, beta1, gamma2, beta2):
    m1 = jnp.mean(x, axis=0, keepdims=True)
    v1 = jnp.mean((x - m1) ** 2, axis=0, keepdims=True)
    h = (x - m1) / jnp.sqrt(v1 + BN_EPS) * gamma1 + beta1
    h = jnp.maximum(h, 0.0)
    y = jnp.dot(h.astype(jnp.bfloat16), w2.T.astype(jnp.bfloat16),
                preferred_element_type=jnp.float32)
    m2 = jnp.mean(y, axis=0, keepdims=True)
    v2 = jnp.mean((y - m2) ** 2, axis=0, keepdims=True)
    return (y - m2) / jnp.sqrt(v2 + BN_EPS) * gamma2 + beta2


if __name__ == "__main__":
    IN_F, OUT_F = 32, 16

    key = jax.random.PRNGKey(0)
    kx0, kw1, kb1, kw2, kx1, kx2, kg, kb = jax.random.split(key, 8)

    # Parameters mirroring nn.Linear's uniform(-1/sqrt(fan_in), +1/sqrt(fan_in)).
    bound1 = 1.0 / float(IN_F) ** 0.5
    w1 = jax.random.uniform(kw1, (IN_F, IN_F), jnp.float32, -bound1, bound1)
    b1 = jax.random.uniform(kb1, (IN_F,), jnp.float32, -bound1, bound1)
    w2 = jax.random.uniform(kw2, (OUT_F, IN_F), jnp.float32, -bound1, bound1)

    # Non-trivial BatchNorm affine params (exercise the scale/shift folds).
    gamma1 = 1.0 + 0.1 * jax.random.normal(kg, (IN_F,), jnp.float32)
    beta1 = 0.1 * jax.random.normal(kb, (IN_F,), jnp.float32)
    gamma2 = 1.0 + 0.1 * jax.random.normal(jax.random.fold_in(kg, 1),
                                           (OUT_F,), jnp.float32)
    beta2 = 0.1 * jax.random.normal(jax.random.fold_in(kb, 1),
                                    (OUT_F,), jnp.float32)

    # TODO(synk): nn.Dropout(0.2) is constructed in __init__ but never applied
    # in forward, so it is intentionally not implemented here. BatchNorm
    # running_mean/var buffer updates are also not modeled.

    def check(out, xin):
        ref_bf16 = _reference_bf16_matmul(xin, w2, gamma1, beta1, gamma2, beta2)
        ref_f32 = _reference_f32(xin, w2, gamma1, beta1, gamma2, beta2)
        assert out.shape == (xin.shape[0], OUT_F)
        assert jnp.allclose(out, ref_bf16, atol=5e-3, rtol=5e-3)
        assert jnp.allclose(out, ref_f32, atol=5e-2, rtol=5e-2)

    # 1) Small-problem fast path (whole batch resident in VMEM).
    x_small = jax.random.normal(kx0, (8, IN_F), jnp.float32)
    out = jax.block_until_ready(
        jax.jit(mlp_forward)(x_small, w1, b1, w2, gamma1, beta1, gamma2, beta2))
    check(out, x_small)

    # 2) Tiled 3-phase path with staged y (exact tile divisor, no masking).
    tiled_fn = jax.jit(functools.partial(mlp_forward,
                                         _force_tiled=True, _force_tile_n=8))
    x_tiled = jax.random.normal(kx1, (24, IN_F), jnp.float32)
    out = jax.block_until_ready(
        tiled_fn(x_tiled, w1, b1, w2, gamma1, beta1, gamma2, beta2))
    check(out, x_tiled)

    # 3) Tiled path with a padded batch + masked statistics (n % tile_n != 0).
    x_mask = jax.random.normal(kx2, (20, IN_F), jnp.float32)
    out = jax.block_until_ready(
        tiled_fn(x_mask, w1, b1, w2, gamma1, beta1, gamma2, beta2))
    check(out, x_mask)

    # 4) Tiled recompute fallback (y staging disabled).
    nostage_fn = jax.jit(functools.partial(mlp_forward, _force_tiled=True,
                                           _force_tile_n=8, _force_stage_y=False))
    out = jax.block_until_ready(
        nostage_fn(x_tiled, w1, b1, w2, gamma1, beta1, gamma2, beta2))
    check(out, x_tiled)

    print("KERNEL_OK")
</pallas_src>

<mosaic_0001>
module attributes {stable_mosaic.version = 11 : i64} {
  func.func @_mlp_single_block_kernel(%arg0: memref<8x32xf32, #tpu.memory_space<vmem>>, %arg1: memref<32x128xbf16, #tpu.memory_space<vmem>>, %arg2: memref<1x32xf32, #tpu.memory_space<vmem>>, %arg3: memref<1x32xf32, #tpu.memory_space<vmem>>, %arg4: memref<1x128xf32, #tpu.memory_space<vmem>>, %arg5: memref<1x128xf32, #tpu.memory_space<vmem>>, %arg6: memref<8x128xf32, #tpu.memory_space<vmem>>) attributes {dimension_semantics = [], scalar_prefetch = 0 : i64, scratch_operands = 0 : i64, tpu.core_type = #tpu.core_type<tc>} {
    %c0 = arith.constant 0 : index
    %c0_0 = arith.constant 0 : index
    %0 = vector.load %arg0[%c0, %c0_0] : memref<8x32xf32, #tpu.memory_space<vmem>>, vector<8x32xf32>
    %cst = arith.constant dense<0.000000e+00> : vector<32xf32>
    %1 = vector.multi_reduction <add>, %0, %cst [0] : vector<8x32xf32> to vector<32xf32>
    %2 = vector.shape_cast %1 : vector<32xf32> to vector<1x32xf32>
    %cst_1 = arith.constant 8.000000e+00 : f32
    %3 = vector.broadcast %cst_1 : f32 to vector<1x32xf32>
    %4 = arith.divf %2, %3 : vector<1x32xf32>
    %5 = vector.broadcast %4 : vector<1x32xf32> to vector<8x32xf32>
    %6 = arith.subf %0, %5 : vector<8x32xf32>
    %7 = arith.mulf %6, %6 : vector<8x32xf32>
    %cst_2 = arith.constant dense<0.000000e+00> : vector<32xf32>
    %8 = vector.multi_reduction <add>, %7, %cst_2 [0] : vector<8x32xf32> to vector<32xf32>
    %9 = vector.shape_cast %8 : vector<32xf32> to vector<1x32xf32>
    %cst_3 = arith.constant 8.000000e+00 : f32
    %10 = vector.broadcast %cst_3 : f32 to vector<1x32xf32>
    %11 = arith.divf %9, %10 : vector<1x32xf32>
    %cst_4 = arith.constant 9.99999974E-6 : f32
    %12 = vector.broadcast %cst_4 : f32 to vector<1x32xf32>
    %13 = arith.addf %11, %12 : vector<1x32xf32>
    %14 = math.rsqrt %13 : vector<1x32xf32>
    %15 = vector.broadcast %14 : vector<1x32xf32> to vector<8x32xf32>
    %16 = arith.mulf %6, %15 : vector<8x32xf32>
    %c0_5 = arith.constant 0 : index
    %c0_6 = arith.constant 0 : index
    %17 = vector.load %arg2[%c0_5, %c0_6] : memref<1x32xf32, #tpu.memory_space<vmem>>, vector<1x32xf32>
    %18 = vector.broadcast %17 : vector<1x32xf32> to vector<8x32xf32>
    %19 = arith.mulf %16, %18 : vector<8x32xf32>
    %c0_7 = arith.constant 0 : index
    %c0_8 = arith.constant 0 : index
    %20 = vector.load %arg3[%c0_7, %c0_8] : memref<1x32xf32, #tpu.memory_space<vmem>>, vector<1x32xf32>
    %21 = vector.broadcast %20 : vector<1x32xf32> to vector<8x32xf32>
    %22 = arith.addf %19, %21 : vector<8x32xf32>
    %cst_9 = arith.constant 0.000000e+00 : f32
    %23 = vector.broadcast %cst_9 : f32 to vector<8x32xf32>
    %24 = arith.maximumf %22, %23 : vector<8x32xf32>
    %25 = arith.truncf %24 : vector<8x32xf32> to vector<8x32xbf16>
    %c0_10 = arith.constant 0 : index
    %c0_11 = arith.constant 0 : index
    %26 = vector.load %arg1[%c0_10, %c0_11] : memref<32x128xbf16, #tpu.memory_space<vmem>>, vector<32x128xbf16>
    %cst_12 = arith.constant dense<0.000000e+00> : vector<8x128xf32>
    %27 = tpu.matmul %25, %26, %cst_12 {dimension_numbers = #tpu.dot_dimension_numbers<[1], [0], [0], [1], [0, 0, 1, 1], [], []>} : vector<8x32xbf16>, vector<32x128xbf16>, vector<8x128xf32> -> vector<8x128xf32>
    %cst_13 = arith.constant dense<0.000000e+00> : vector<128xf32>
    %28 = vector.multi_reduction <add>, %27, %cst_13 [0] : vector<8x128xf32> to vector<128xf32>
    %29 = vector.shape_cast %28 : vector<128xf32> to vector<1x128xf32>
    %cst_14 = arith.constant 8.000000e+00 : f32
    %30 = vector.broadcast %cst_14 : f32 to vector<1x128xf32>
    %31 = arith.divf %29, %30 : vector<1x128xf32>
    %32 = vector.broadcast %31 : vector<1x128xf32> to vector<8x128xf32>
    %33 = arith.subf %27, %32 : vector<8x128xf32>
    %34 = arith.mulf %33, %33 : vector<8x128xf32>
    %cst_15 = arith.constant dense<0.000000e+00> : vector<128xf32>
    %35 = vector.multi_reduction <add>, %34, %cst_15 [0] : vector<8x128xf32> to vector<128xf32>
    %36 = vector.shape_cast %35 : vector<128xf32> to vector<1x128xf32>
    %cst_16 = arith.constant 8.000000e+00 : f32
    %37 = vector.broadcast %cst_16 : f32 to vector<1x128xf32>
    %38 = arith.divf %36, %37 : vector<1x128xf32>
    %cst_17 = arith.constant 9.99999974E-6 : f32
    %39 = vector.broadcast %cst_17 : f32 to vector<1x128xf32>
    %40 = arith.addf %38, %39 : vector<1x128xf32>
    %41 = math.rsqrt %40 : vector<1x128xf32>
    %42 = vector.broadcast %41 : vector<1x128xf32> to vector<8x128xf32>
    %43 = arith.mulf %33, %42 : vector<8x128xf32>
    %c0_18 = arith.constant 0 : index
    %c0_19 = arith.constant 0 : index
    %44 = vector.load %arg4[%c0_18, %c0_19] : memref<1x128xf32, #tpu.memory_space<vmem>>, vector<1x128xf32>
    %45 = vector.broadcast %44 : vector<1x128xf32> to vector<8x128xf32>
    %46 = arith.mulf %43, %45 : vector<8x128xf32>
    %c0_20 = arith.constant 0 : index
    %c0_21 = arith.constant 0 : index
    %47 = vector.load %arg5[%c0_20, %c0_21] : memref<1x128xf32, #tpu.memory_space<vmem>>, vector<1x128xf32>
    %48 = vector.broadcast %47 : vector<1x128xf32> to vector<8x128xf32>
    %49 = arith.addf %46, %48 : vector<8x128xf32>
    %c0_22 = arith.constant 0 : index
    %c0_23 = arith.constant 0 : index
    %50 = vector.load %arg6[%c0_22, %c0_23] : memref<8x128xf32, #tpu.memory_space<vmem>>, vector<8x128xf32>
    tpu.vector_store %arg6[%c0_22, %c0_23], %49 {strides = array<i32>} : memref<8x128xf32, #tpu.memory_space<vmem>>, vector<8x128xf32>,
    return
  }
}

</mosaic_0001>

<bundles_post_ra>
// kernel: mlp_forward.1
= control target key start
LH: loop header
LB: loop body
LE: loop exit
PB: predicated region body
PF: predicated region fallthrough
CT: control target
= control target key end

     0   :  { %v227_v1 = vmov 0.0   ;;  %vm228_vm0 = vmmov 0   ;;  %vm26_vm1 = vcmask 261120   ;;  %s301_s0 = inlined_call_operand.vmem [shape: f32[8,32], index: 0, kind: input, shape index: {}]   ;;  %s302_s1 = inlined_call_operand.vmem [shape: bf16[32,128], index: 1, kind: input, shape index: {}]   ;;  %s303_s2 = inlined_call_operand.vmem [shape: f32[1,32], index: 2, kind: input, shape index: {}]   ;;  %s304_s3 = inlined_call_operand.vmem [shape: f32[1,32], index: 3, kind: input, shape index: {}]   ;;  %s305_s4 = inlined_call_operand.vmem [shape: f32[1,128], index: 4, kind: input, shape index: {}]   ;;  %s306_s5 = inlined_call_operand.vmem [shape: f32[1,128], index: 5, kind: input, shape index: {}]   ;;  %s307_s6 = inlined_call_operand.hbm [shape: f32[8,128], index: 6, kind: output, shape index: {}]  }
   0x1   :  { %v197_v0 = vld [vmem:[%s302_s1] sm:$0xff]   ;;  %186 = vmatprep.subr.bf16.mxu0 %v227_v1  ;;  %v198_v2 = vld [vmem:[%s302_s1 + $0x8] sm:$0xff]   ;;  %190 = vmatprep.mubr.msk.bf16.mxu0 %vm228_vm0, %v227_v1 }
   0x2   :  { %187 = vmatpush3.bf16.msra.mxu0 %v197_v0  ;;  %v25_v3 = vld [vmem:[%s301_s0] sm:$0xff] }
   0x3   :  { %188 = vmatprep.subr.bf16.mxu0 %v227_v1  ;;  %v27_v4 = vsel %vm26_vm1, %v25_v3, 0.0 }
   0x4   :  { %11 = vsyncpa [#allocation3], 0  ;;  %v28_v5 = vrot.slane %v27_v4, 4  ;;  %v176_v24 = vld [vmem:[%s303_s2] ss:$0 sm:$0xff]  ;;  %s229_s7 = smov [#allocation2]  }
   0x5   :  { %v177_v26 = vld [vmem:[%s304_s3] ss:$0 sm:$0xff]  ;;  %s168_s8 = sshll.u32 %s229_s7, 4  ;;  %s169_s8 = int_to_ptr.vmem [resolvable:$true] %s168_s8 }
   0x6   :  { %189 = vmatpush3.bf16.msra.mxu0 %v198_v2  ;;  %v29_v6 = vadd.f32 %v28_v5, %v27_v4  ;;  %v181_v53 = vld [vmem:[%s305_s4] ss:$0 sm:$0xff]  ;;  %s203_s9 = scalar_lea.vmem %s169_s8, 128  ;;  %p208_p1 = scmp.lt.s32.totalorder %s169_s8, %s169_s8 }
   0x7   :  { %v182_v55 = vld [vmem:[%s306_s5] ss:$0 sm:$0xff]  ;;  %p204_p0 = scmp.ne.s32.totalorder %s169_s8, %s203_s9  ;;  %p209_p2 = scmp.lt.s32.totalorder %s203_s9, %s203_s9 }
   0x8   :  { %v30_v7 = vrot.slane %v29_v6, 2 }
   0x9   :  { %p210_p3 = por %p209_p2, %p208_p1 }
   0xa   :  { %v31_v8 = vadd.f32 %v30_v7, %v29_v6 }
   0xb   :  { %p211_p4 = pnand %p210_p3, %p204_p0 }
   0xc   :  { %v32_v9 = vrot.slane %v31_v8, 1 }
   0xe   :  { %v33_v10 = vadd.f32 %v32_v9, %v31_v8 }
  0x10   :  { %v35_v11 = vmul.f32 0.125, %v33_v10 }
  0x12   :  { %v36_v12 = vsub.f32 %v25_v3, %v35_v11 }
  0x14   :  { %v37_v13 = vmul.f32 %v36_v12, %v36_v12 }
  0x16   :  { %v38_v14 = vsel %vm26_vm1, %v37_v13, 0.0 }
  0x17   :  { %v39_v15 = vrot.slane %v38_v14, 4 }
  0x19   :  { %v40_v16 = vadd.f32 %v39_v15, %v38_v14 }
  0x1b   :  { %v41_v17 = vrot.slane %v40_v16, 2 }
  0x1d   :  { %v42_v18 = vadd.f32 %v41_v17, %v40_v16 }
  0x1f   :  { %v43_v19 = vrot.slane %v42_v18, 1 }
  0x21   :  { %v44_v20 = vadd.f32 %v43_v19, %v42_v18 }
  0x23   :  { %v45_v21 = vmul.f32 0.125, %v44_v20 }
  0x25   :  { %v46_v22 = vadd.f32 1e-05, %v45_v21 }
  0x27   :  { %199 = vrsqrt.f32 %v46_v22 }
  0x31   :  { %v200_v23 = vpop.eup %199 }
  0x32   :  { %v48_v25 = vmul.f32 %v200_v23, %v36_v12 }
  0x34   :  { %v56_v27 = vmul.f32 %v176_v24, %v48_v25 }
  0x36   :  { %v64_v28 = vadd.f32 %v177_v26, %v56_v27 }
  0x38   :  { %v65_v29 = vmax.f32 %v64_v28, 0.0 }
  0x3a   :  { %v66_v30 = vpack.c.bf16 %v65_v29, %v65_v29 }
  0x3c   :  { %191 = vmatmul.mubr.msk.bf16.vlgmr.msra.gmra.mrb[0].mxu0 %vm26_vm1, %v66_v30 }
 0x10f   :  { %v120_v31 = vpop.f32.mrb[0].mxu0 }
 0x110   :  { %v126_v32 = vrot.slane %v120_v31, 4  ;;  %v192_v33 = vpop.f32.mrb[1].mxu0 }
 0x111   :  { %v123_v34 = vpop.f32.mrb[2].mxu0 }
 0x112   :  { %v127_v35 = vadd.f32 %v126_v32, %v120_v31  ;;  %v193_v36 = vpop.f32.mrb[3].mxu0 }
 0x114   :  { %v128_v37 = vrot.slane %v127_v35, 2 }
 0x116   :  { %v129_v38 = vadd.f32 %v128_v37, %v127_v35 }
 0x118   :  { %v130_v39 = vrot.slane %v129_v38, 1 }
 0x11a   :  { %v131_v40 = vadd.f32 %v130_v39, %v129_v38 }
 0x11c   :  { %v132_v41 = vmul.f32 0.125, %v131_v40 }
 0x11e   :  { %v133_v42 = vsub.f32 %v120_v31, %v132_v41 }
 0x120   :  { %v134_v43 = vmul.f32 %v133_v42, %v133_v42 }
 0x122   :  { %v135_v44 = vrot.slane %v134_v43, 4 }
 0x124   :  { %v136_v45 = vadd.f32 %v135_v44, %v134_v43 }
 0x126   :  { %v137_v46 = vrot.slane %v136_v45, 2 }
 0x128   :  { %v138_v47 = vadd.f32 %v137_v46, %v136_v45 }
 0x12a   :  { %v139_v48 = vrot.slane %v138_v47, 1 }
 0x12c   :  { %v140_v49 = vadd.f32 %v139_v48, %v138_v47 }
 0x12e   :  { %v141_v50 = vmul.f32 0.125, %v140_v49 }
 0x130   :  { %v142_v51 = vadd.f32 1e-05, %v141_v50 }
 0x132   :  { %201 = vrsqrt.f32 %v142_v51 }
 0x13c   :  { %v202_v52 = vpop.eup %201 }
 0x13d   :  { %v144_v54 = vmul.f32 %v202_v52, %v133_v42 }
 0x13f   :  { %v152_v56 = vmul.f32 %v181_v53, %v144_v54 }
 0x141   :  { %v160_v57 = vadd.f32 %v182_v55, %v152_v56 }
 0x143   :  { %161 = vst [vmem:[#allocation2] sm:$0xff] %v160_v57 }
 0x144   :  { %214 = shalt.err (!%p211_p4)
}
 0x145   :  { %s215_s11 = scalar_lea.hbm %s307_s6, 128 }
 0x146   :  { %p216_p5 = scmp.ne.s32.totalorder %s307_s6, %s215_s11  ;;  %p219_p6 = scmp.lt.u32.totalorder %s215_s11, %s307_s6 }
 0x148   :  { %p221_p7 = pnand %p219_p6, %p216_p5 }
 0x14a   :  { %224 = shalt.err (!%p221_p7)
}
 0x14b   :  { %171 = dma.vmem_to_hbm [thread:$0]  %s169_s8, 128, %s307_s6, [#allocation3]  }
 0x14c   :  { %225 = dma.done.wait [#allocation3], 128  }
 0x14d   :  { %226 = vsyncadd [#allocation3], 4294967168 }
 0x14e   :  { %175 = vsyncpa [#allocation3], 1 }

</bundles_post_ra>
